<compile_context>
chip_gen: v5e
topology: v5e:2x2
jax: 0.10.0
libtpu: 0.0.40
codegen_flags: <defaults>
</compile_context>

<pallas_src>
import numpy as np
import jax
import jax.numpy as jnp
from jax.experimental import pallas as pl
from jax.experimental.pallas import tpu as pltpu

HIDDEN = 128
HEAD_W = 8   # packed heads: lanes 0:2 = out_product (sigmoid), lane 2 = out_order, rest zero


def _cdiv(a, b):
    return (a + b - 1) // b


def _round_up(x, m):
    return _cdiv(x, m) * m


def dqn_kernel(x_ref, w1_ref, b1_ref, w2_ref, b2_ref, wh_ref, bh_ref, out_ref):
    hp = jax.lax.Precision.HIGHEST

    # layer1 (normalization already folded into w1/b1 by the wrapper) + ReLU
    h1 = jnp.dot(x_ref[...], w1_ref[...],
                 preferred_element_type=jnp.float32, precision=hp) + b1_ref[...]
    h1 = jnp.maximum(h1, 0.0)

    # layer2 + ReLU
    h2 = jnp.dot(h1.astype(w2_ref.dtype), w2_ref[...],
                 preferred_element_type=jnp.float32, precision=hp) + b2_ref[...]
    h2 = jnp.maximum(h2, 0.0)

    # Packed 8-wide heads: lanes 0:2 = out_product (sigmoid), lane 2 = out_order (linear).
    heads = jnp.dot(h2.astype(wh_ref.dtype), wh_ref[...],
                    preferred_element_type=jnp.float32, precision=hp) + bh_ref[...]
    lane = jax.lax.broadcasted_iota(jnp.int32, heads.shape, dimension=1)
    out_ref[...] = jnp.where(lane < 2, jax.nn.sigmoid(heads), heads)


def _default_tile_b(batch):
    b8 = _round_up(max(batch, 1), 8)
    if b8 <= 512:
        return b8                                   # single tile for small batches
    # Large batches: biggest tile up to 4096 rows, but keep >= 2 grid steps so v7x's two
    # TensorCores both get work on the "parallel" batch axis.
    return min(4096, _round_up(_cdiv(b8, 2), 256))


def _vmem_limit_bytes(tile_b, n_obs, itemsize):
    f32 = 4
    x_tiles = 2 * tile_b * n_obs * itemsize          # double-buffered input tile
    out_tiles = 2 * tile_b * HEAD_W * f32            # double-buffered 8-wide output tile
    weights = 2 * itemsize * (n_obs * HIDDEN + HIDDEN          # w1, b1
                              + HIDDEN * HIDDEN + HIDDEN       # w2, b2
                              + HIDDEN * HEAD_W + HEAD_W)      # packed heads
    acts = 3 * tile_b * HIDDEN * f32                 # h1/h2 materialized by the compiler
    needed = x_tiles + out_tiles + weights + acts
    # Headroom for compiler scratch, capped well under v7x's 64 MiB/TC VMEM.
    return int(min(2 * needed + (8 << 20), 32 << 20))


def dqn_forward(x, params, tile_b=None, compute_dtype=jnp.float32):
    """Runs the DQN forward pass.  Returns (out_product (B,2), out_order (B,1))."""
    B, n_obs = x.shape
    w1, b1, w2, b2, wh, bh = params

    if tile_b is None:
        tile_b = _default_tile_b(B)
    tile_b = max(8, _round_up(tile_b, 8))
    B_pad = _round_up(B, tile_b)

    # --- Global normalization stats in ONE pass over x (torch.std is unbiased: /(n-1)). ---
    xf = x.astype(jnp.float32)
    n = xf.size
    s1 = jnp.sum(xf)
    s2 = jnp.sum(xf * xf)
    mean = s1 / n
    var = (s2 - n * mean * mean) / (n - 1)
    inv_std = jax.lax.rsqrt(var)   # constant input -> inf/NaN, same as the torch reference

    # --- Fold (x - mean) * inv_std into layer1:  xn @ w1 + b1 == x @ w1f + b1f. ---
    w1f = w1 * inv_std
    b1f = b1 - (mean * inv_std) * jnp.sum(w1, axis=0, keepdims=True)

    cd = jnp.dtype(compute_dtype)
    x_pad = xf if B_pad == B else jnp.pad(xf, ((0, B_pad - B), (0, 0)))
    x_pad = x_pad.astype(cd)

    grid = (B_pad // tile_b,)
    const = lambda i: (0, 0)   # weights/biases stay VMEM-resident across the batch grid

    heads = pl.pallas_call(
        dqn_kernel,
        out_shape=jax.ShapeDtypeStruct((B_pad, HEAD_W), jnp.float32),
        grid=grid,
        in_specs=[
            pl.BlockSpec((tile_b, n_obs), lambda i: (i, 0)),     # x tile
            pl.BlockSpec((n_obs, HIDDEN), const),                # folded w1
            pl.BlockSpec((1, HIDDEN), const),                    # folded b1
            pl.BlockSpec((HIDDEN, HIDDEN), const),               # w2
            pl.BlockSpec((1, HIDDEN), const),                    # b2
            pl.BlockSpec((HIDDEN, HEAD_W), const),               # packed head weights (8-wide)
            pl.BlockSpec((1, HEAD_W), const),                    # packed head bias
        ],
        out_specs=pl.BlockSpec((tile_b, HEAD_W), lambda i: (i, 0)),
        compiler_params=pltpu.CompilerParams(
            dimension_semantics=("parallel",),
            vmem_limit_bytes=_vmem_limit_bytes(tile_b, n_obs, cd.itemsize),
        ),
    )(x_pad, w1f.astype(cd), b1f.astype(cd), w2.astype(cd), b2.astype(cd),
      wh.astype(cd), bh.astype(cd))

    # Wrapper-side slicing of the packed, padded slab (free layout plumbing).
    out_product = heads[:B, 0:2]
    out_order = heads[:B, 2:3]
    return out_product, out_order


def init_params(key, n_observations):
    """Deterministic init mimicking nn.Linear defaults: U(-1/sqrt(fan_in), 1/sqrt(fan_in))."""
    def linear(k, fan_in, fan_out):
        kw, kb = jax.random.split(k)
        bound = 1.0 / np.sqrt(fan_in)
        w = jax.random.uniform(kw, (fan_in, fan_out), jnp.float32, -bound, bound)
        b = jax.random.uniform(kb, (1, fan_out), jnp.float32, -bound, bound)
        return w, b

    k1, k2, k3, k4 = jax.random.split(key, 4)
    w1, b1 = linear(k1, n_observations, HIDDEN)     # layer1
    w2, b2 = linear(k2, HIDDEN, HIDDEN)             # layer2
    wp, bp = linear(k3, HIDDEN, 2)                  # out_product
    wo, bo = linear(k4, HIDDEN, 1)                  # out_order

    # Pack the two small heads into one 8-wide slab (zero padded).
    wh = jnp.zeros((HIDDEN, HEAD_W), jnp.float32).at[:, 0:2].set(wp).at[:, 2:3].set(wo)
    bh = jnp.zeros((1, HEAD_W), jnp.float32).at[:, 0:2].set(bp).at[:, 2:3].set(bo)
    return (w1, b1, w2, b2, wh, bh), (w1, b1, w2, b2, wp, bp, wo, bo)


def reference_forward(x, raw_params):
    """Pure-JAX reference replicating the PyTorch semantics (f32, highest-precision matmuls)."""
    w1, b1, w2, b2, wp, bp, wo, bo = raw_params
    hp = jax.lax.Precision.HIGHEST
    mean = jnp.mean(x)
    std = jnp.sqrt(jnp.sum((x - mean) ** 2) / (x.size - 1))  # torch.std: unbiased
    xn = (x - mean) / std
    h1 = jax.nn.relu(jnp.dot(xn, w1, precision=hp) + b1)
    h2 = jax.nn.relu(jnp.dot(h1, w2, precision=hp) + b2)
    out_product = jax.nn.sigmoid(jnp.dot(h2, wp, precision=hp) + bp)
    out_order = jnp.dot(h2, wo, precision=hp) + bo
    return out_product, out_order


if __name__ == "__main__":
    key = jax.random.PRNGKey(0)
    k_x, k_p, k_x2 = jax.random.split(key, 3)

    B, N_OBS = 8, 16
    x = jax.random.normal(k_x, (B, N_OBS), jnp.float32)
    params, raw_params = init_params(k_p, N_OBS)

    out_prod, out_order = dqn_forward(x, params)
    out_prod = jax.block_until_ready(out_prod)
    out_order = jax.block_until_ready(out_order)

    ref_prod, ref_order = reference_forward(x, raw_params)
    assert out_prod.shape == (B, 2) and out_order.shape == (B, 1)
    np.testing.assert_allclose(np.asarray(out_prod), np.asarray(ref_prod), rtol=1e-3, atol=1e-3)
    np.testing.assert_allclose(np.asarray(out_order), np.asarray(ref_order), rtol=1e-3, atol=1e-3)

    # Second case: batch larger than one tile, exercising the multi-step grid + padding path.
    B2 = 200
    x2 = jax.random.normal(k_x2, (B2, N_OBS), jnp.float32)
    p2, o2 = dqn_forward(x2, params, tile_b=128)
    p2 = jax.block_until_ready(p2)
    o2 = jax.block_until_ready(o2)
    rp2, ro2 = reference_forward(x2, raw_params)
    assert p2.shape == (B2, 2) and o2.shape == (B2, 1)
    np.testing.assert_allclose(np.asarray(p2), np.asarray(rp2), rtol=1e-3, atol=1e-3)
    np.testing.assert_allclose(np.asarray(o2), np.asarray(ro2), rtol=1e-3, atol=1e-3)

    print("KERNEL_OK")
</pallas_src>

<mosaic_0001>
module attributes {stable_mosaic.version = 11 : i64} {
  func.func @dqn_kernel(%arg0: i32, %arg1: memref<8x16xf32, #tpu.memory_space<vmem>>, %arg2: memref<16x128xf32, #tpu.memory_space<vmem>>, %arg3: memref<1x128xf32, #tpu.memory_space<vmem>>, %arg4: memref<128x128xf32, #tpu.memory_space<vmem>>, %arg5: memref<1x128xf32, #tpu.memory_space<vmem>>, %arg6: memref<128x8xf32, #tpu.memory_space<vmem>>, %arg7: memref<1x8xf32, #tpu.memory_space<vmem>>, %arg8: memref<8x8xf32, #tpu.memory_space<vmem>>) attributes {dimension_semantics = [#tpu.dimension_semantics<parallel>], iteration_bounds = array<i64: 1>, scalar_prefetch = 0 : i64, scratch_operands = 0 : i64, tpu.core_type = #tpu.core_type<tc>, window_params = [{transform_indices = @transform_0, window_bounds = array<i64: 8, 16>}, {pipeline_mode = #tpu.pipeline_mode<synchronous>, transform_indices = @transform_1, window_bounds = array<i64: 16, 128>}, {pipeline_mode = #tpu.pipeline_mode<synchronous>, transform_indices = @transform_2, window_bounds = array<i64: 1, 128>}, {pipeline_mode = #tpu.pipeline_mode<synchronous>, transform_indices = @transform_3, window_bounds = array<i64: 128, 128>}, {pipeline_mode = #tpu.pipeline_mode<synchronous>, transform_indices = @transform_4, window_bounds = array<i64: 1, 128>}, {pipeline_mode = #tpu.pipeline_mode<synchronous>, transform_indices = @transform_5, window_bounds = array<i64: 128, 8>}, {pipeline_mode = #tpu.pipeline_mode<synchronous>, transform_indices = @transform_6, window_bounds = array<i64: 1, 8>}, {transform_indices = @transform_7, window_bounds = array<i64: 8, 8>}]} {
    %c0 = arith.constant 0 : index
    %c0_0 = arith.constant 0 : index
    %0 = vector.load %arg1[%c0, %c0_0] : memref<8x16xf32, #tpu.memory_space<vmem>>, vector<8x16xf32>
    %c0_1 = arith.constant 0 : index
    %c0_2 = arith.constant 0 : index
    %1 = vector.load %arg2[%c0_1, %c0_2] : memref<16x128xf32, #tpu.memory_space<vmem>>, vector<16x128xf32>
    %cst = arith.constant dense<0.000000e+00> : vector<8x128xf32>
    %2 = tpu.matmul %0, %1, %cst {dimension_numbers = #tpu.dot_dimension_numbers<[1], [0], [0], [1], [0, 0, 1, 1], [], []>, precision = #tpu.contract_precision<fp32>} : vector<8x16xf32>, vector<16x128xf32>, vector<8x128xf32> -> vector<8x128xf32>
    %c0_3 = arith.constant 0 : index
    %c0_4 = arith.constant 0 : index
    %3 = vector.load %arg3[%c0_3, %c0_4] : memref<1x128xf32, #tpu.memory_space<vmem>>, vector<1x128xf32>
    %4 = vector.broadcast %3 : vector<1x128xf32> to vector<8x128xf32>
    %5 = arith.addf %2, %4 : vector<8x128xf32>
    %cst_5 = arith.constant 0.000000e+00 : f32
    %6 = vector.broadcast %cst_5 : f32 to vector<8x128xf32>
    %7 = arith.maximumf %5, %6 : vector<8x128xf32>
    %c0_6 = arith.constant 0 : index
    %c0_7 = arith.constant 0 : index
    %8 = vector.load %arg4[%c0_6, %c0_7] : memref<128x128xf32, #tpu.memory_space<vmem>>, vector<128x128xf32>
    %cst_8 = arith.constant dense<0.000000e+00> : vector<8x128xf32>
    %9 = tpu.matmul %7, %8, %cst_8 {dimension_numbers = #tpu.dot_dimension_numbers<[1], [0], [0], [1], [0, 0, 1, 1], [], []>, precision = #tpu.contract_precision<fp32>} : vector<8x128xf32>, vector<128x128xf32>, vector<8x128xf32> -> vector<8x128xf32>
    %c0_9 = arith.constant 0 : index
    %c0_10 = arith.constant 0 : index
    %10 = vector.load %arg5[%c0_9, %c0_10] : memref<1x128xf32, #tpu.memory_space<vmem>>, vector<1x128xf32>
    %11 = vector.broadcast %10 : vector<1x128xf32> to vector<8x128xf32>
    %12 = arith.addf %9, %11 : vector<8x128xf32>
    %cst_11 = arith.constant 0.000000e+00 : f32
    %13 = vector.broadcast %cst_11 : f32 to vector<8x128xf32>
    %14 = arith.maximumf %12, %13 : vector<8x128xf32>
    %c0_12 = arith.constant 0 : index
    %c0_13 = arith.constant 0 : index
    %15 = vector.load %arg6[%c0_12, %c0_13] : memref<128x8xf32, #tpu.memory_space<vmem>>, vector<128x8xf32>
    %cst_14 = arith.constant dense<0.000000e+00> : vector<8x8xf32>
    %16 = tpu.matmul %14, %15, %cst_14 {dimension_numbers = #tpu.dot_dimension_numbers<[1], [0], [0], [1], [0, 0, 1, 1], [], []>, precision = #tpu.contract_precision<fp32>} : vector<8x128xf32>, vector<128x8xf32>, vector<8x8xf32> -> vector<8x8xf32>
    %c0_15 = arith.constant 0 : index
    %c0_16 = arith.constant 0 : index
    %17 = vector.load %arg7[%c0_15, %c0_16] : memref<1x8xf32, #tpu.memory_space<vmem>>, vector<1x8xf32>
    %18 = vector.broadcast %17 : vector<1x8xf32> to vector<8x8xf32>
    %19 = arith.addf %16, %18 : vector<8x8xf32>
    %20 = tpu.iota {dimensions = array<i32: 1>} : vector<8x8xi32>
    %c2_i32 = arith.constant 2 : i32
    %21 = vector.broadcast %c2_i32 : i32 to vector<8x8xi32>
    %22 = arith.cmpi slt, %20, %21 : vector<8x8xi32>
    %23 = arith.negf %19 : vector<8x8xf32>
    %24 = math.exp %23 : vector<8x8xf32>
    %cst_17 = arith.constant 1.000000e+00 : f32
    %25 = vector.broadcast %cst_17 : f32 to vector<8x8xf32>
    %26 = arith.addf %25, %24 : vector<8x8xf32>
    %27 = arith.divf %25, %26 : vector<8x8xf32>
    %28 = arith.select %22, %27, %19 : vector<8x8xi1>, vector<8x8xf32>
    %c0_18 = arith.constant 0 : index
    %c0_19 = arith.constant 0 : index
    %29 = vector.load %arg8[%c0_18, %c0_19] : memref<8x8xf32, #tpu.memory_space<vmem>>, vector<8x8xf32>
    tpu.vector_store %arg8[%c0_18, %c0_19], %28 {strides = array<i32>} : memref<8x8xf32, #tpu.memory_space<vmem>>, vector<8x8xf32>,
    return
  }
  func.func @transform_0(%arg0: i32) -> (i32, i32) {
    %c0_i32 = arith.constant 0 : i32
    %c0_i32_0 = arith.constant 0 : i32
    return %arg0, %c0_i32 : i32, i32
  }
  func.func @transform_1(%arg0: i32) -> (i32, i32) {
    %c0_i32 = arith.constant 0 : i32
    %c0_i32_0 = arith.constant 0 : i32
    %c0_i32_1 = arith.constant 0 : i32
    return %c0_i32, %c0_i32_0 : i32, i32
  }
  func.func @transform_2(%arg0: i32) -> (i32, i32) {
    %c0_i32 = arith.constant 0 : i32
    %c0_i32_0 = arith.constant 0 : i32
    %c0_i32_1 = arith.constant 0 : i32
    return %c0_i32, %c0_i32_0 : i32, i32
  }
  func.func @transform_3(%arg0: i32) -> (i32, i32) {
    %c0_i32 = arith.constant 0 : i32
    %c0_i32_0 = arith.constant 0 : i32
    %c0_i32_1 = arith.constant 0 : i32
    return %c0_i32, %c0_i32_0 : i32, i32
  }
  func.func @transform_4(%arg0: i32) -> (i32, i32) {
    %c0_i32 = arith.constant 0 : i32
    %c0_i32_0 = arith.constant 0 : i32
    %c0_i32_1 = arith.constant 0 : i32
    return %c0_i32, %c0_i32_0 : i32, i32
  }
  func.func @transform_5(%arg0: i32) -> (i32, i32) {
    %c0_i32 = arith.constant 0 : i32
    %c0_i32_0 = arith.constant 0 : i32
    %c0_i32_1 = arith.constant 0 : i32
    return %c0_i32, %c0_i32_0 : i32, i32
  }
  func.func @transform_6(%arg0: i32) -> (i32, i32) {
    %c0_i32 = arith.constant 0 : i32
    %c0_i32_0 = arith.constant 0 : i32
    %c0_i32_1 = arith.constant 0 : i32
    return %c0_i32, %c0_i32_0 : i32, i32
  }
  func.func @transform_7(%arg0: i32) -> (i32, i32) {
    %c0_i32 = arith.constant 0 : i32
    %c0_i32_0 = arith.constant 0 : i32
    return %arg0, %c0_i32 : i32, i32
  }
}

</mosaic_0001>

<bundles_post_ra>
// kernel: tpu_custom_call.1
= control target key start
LH: loop header
LB: loop body
LE: loop exit
PB: predicated region body
PF: predicated region fallthrough
CT: control target
= control target key end

     0   :  { %12 = vsyncpa [#allocation3], 0  ;;  %s1654_s0 = inlined_call_operand.vmem [shape: f32[8,16], index: 0, kind: input, shape index: {}]   ;;  %s1655_s1 = inlined_call_operand.hbm [shape: f32[16,128], index: 1, kind: input, shape index: {}]   ;;  %s1656_s2 = inlined_call_operand.vmem [shape: f32[1,128], index: 2, kind: input, shape index: {}]   ;;  %s1657_s3 = inlined_call_operand.vmem [shape: f32[128,128], index: 3, kind: input, shape index: {}]   ;;  %s1658_s4 = inlined_call_operand.vmem [shape: f32[1,128], index: 4, kind: input, shape index: {}]   ;;  %s1659_s5 = inlined_call_operand.vmem [shape: f32[128,8], index: 5, kind: input, shape index: {}]   ;;  %s1660_s6 = inlined_call_operand.vmem [shape: f32[1,8], index: 6, kind: input, shape index: {}]   ;;  %s1661_s7 = inlined_call_operand.hbm [shape: f32[8,8], index: 7, kind: output, shape index: {}]  }
   0x1   :  { %13 = vsyncpa [#allocation4], 0  ;;  %s20_s26 = sshll.u32 %s1655_s1, 4  ;;  %s1043_s27 = smov [#allocation2]   ;;  %s21_s26 = int_to_ptr.hbm [resolvable:$true] %s20_s26 }
   0x2   :  { %s22_s28 = sshll.u32 %s1043_s27, 4  ;;  %s1044_s29 = smov 128   ;;  %s23_s28 = int_to_ptr.vmem [resolvable:$true] %s22_s28 }
   0x3   :  { %s1045_s30 = smov 8  }
   0x4   :  { %28 = dma.hbm_to_vmem [thread:$0]  %s21_s26, 256, %s23_s28, [#allocation3], %s1044_s29, %s1044_s29, %s1045_s30  }
   0x5   :  { %1039 = dma.done.wait [#allocation3], 256  }
   0x6   :  { %1040 = vsyncadd [#allocation3], 4294967040  ;;  %vm50_vm0 = vcmask 130048   ;;  %v45_v0 = vld [vmem:[#allocation2 + $0x8] sm:$0xff]  ;;  %v44_v1 = vld [vmem:[#allocation2] sm:$0xff]  ;;  %s969_s25 = sshll.u32 %s1661_s7, 4  ;;  %s970_s25 = int_to_ptr.hbm [resolvable:$true] %s969_s25 }
   0x7   :  { %v43_v2 = vld [vmem:[%s1654_s0] sm:$0xff]  ;;  %v1093_v3 = vand.u32 4294901760, %v45_v0  ;;  %v1095_v4 = vand.u32 4294901760, %v44_v1  ;;  %v229_v6 = vld [vmem:[%s1657_s3 + $0x78] sm:$0xff]  ;;  %v228_v7 = vld [vmem:[%s1657_s3 + $0x70] sm:$0xff]  ;;  %vm960_vm6 = vcmask 64512  }
   0x8   :  { %v52_v5 = vsel %vm50_vm0, %v43_v2, 0  ;;  %v227_v8 = vld [vmem:[%s1657_s3 + $0x68] sm:$0xff]  ;;  %v1108_v10 = vand.u32 4294901760, %v229_v6  ;;  %v1110_v11 = vand.u32 4294901760, %v228_v7  ;;  %v226_v13 = vld [vmem:[%s1657_s3 + $0x60] sm:$0xff]  ;;  %v225_v14 = vld [vmem:[%s1657_s3 + $0x58] sm:$0xff] }
   0x9   :  { %v1106_v9 = vand.u32 4294901760, %v52_v5  ;;  %v1112_v12 = vand.u32 4294901760, %v227_v8  ;;  %v96_v15 = vsub.f32 %v45_v0, %v1093_v3  ;;  %69 = vmatpush.msra.mxu0 %v1093_v3  ;;  %v102_v16 = vsub.f32 %v44_v1, %v1095_v4  ;;  %153 = vmatpush.msra.mxu3 %v1093_v3  ;;  %v224_v27 = vld [vmem:[%s1657_s3 + $0x50] sm:$0xff]  ;;  %v223_v40 = vld [vmem:[%s1657_s3 + $0x48] sm:$0xff]  ;;  %v222_v44 = vld [vmem:[%s1657_s3 + $0x40] sm:$0xff] }
   0xa   :  { %v1124_v17 = vand.u32 4294901760, %v226_v13  ;;  %v1126_v18 = vand.u32 4294901760, %v225_v14  ;;  %v1130_v20 = vsub.f32 %v229_v6, %v1108_v10  ;;  %v1133_v21 = vsub.f32 %v228_v7, %v1110_v11  ;;  %v221_v45 = vld [vmem:[%s1657_s3 + $0x38] sm:$0xff]  ;;  %v220_v46 = vld [vmem:[%s1657_s3 + $0x30] sm:$0xff]  ;;  %v219_v51 = vld [vmem:[%s1657_s3 + $0x28] sm:$0xff] }
   0xb   :  { %v73_v19 = vsub.f32 %v52_v5, %v1106_v9  ;;  %v1136_v22 = vsub.f32 %v227_v8, %v1112_v12  ;;  %128 = vmatpush.msra.mxu2 %v96_v15  ;;  %71 = vmatpush.msra.mxu0 %v1095_v4  ;;  %v97_v23 = vand.u32 4294901760, %v96_v15  ;;  %v103_v24 = vand.u32 4294901760, %v102_v16  ;;  %v218_v52 = vld [vmem:[%s1657_s3 + $0x20] sm:$0xff]  ;;  %v217_v0 = vld [vmem:[%s1657_s3 + $0x18] sm:$0xff] }
   0xc   :  { %v1140_v25 = vsub.f32 %v226_v13, %v1124_v17  ;;  %v1143_v26 = vsub.f32 %v225_v14, %v1126_v18  ;;  %155 = vmatpush.msra.mxu3 %v1095_v4  ;;  %v277_v29 = vand.u32 4294901760, %v1130_v20  ;;  %v283_v30 = vand.u32 4294901760, %v1133_v21 }
   0xd   :  { %v74_v28 = vand.u32 4294901760, %v73_v19  ;;  %v289_v31 = vand.u32 4294901760, %v1136_v22  ;;  %131 = vmatpush.msra.mxu2 %v102_v16  ;;  %v98_v32 = vsub.f32 %v96_v15, %v97_v23  ;;  %180 = vmatpush.msrb.mxu0 %v97_v23  ;;  %v104_v33 = vsub.f32 %v102_v16, %v103_v24 }
   0xe   :  { %v295_v34 = vand.u32 4294901760, %v1140_v25  ;;  %v301_v35 = vand.u32 4294901760, %v1143_v26  ;;  %134 = vmatmul.f32.vlgmr.msra.gmra.mxu2 %v73_v19  ;;  %v278_v37 = vsub.f32 %v1130_v20, %v277_v29  ;;  %v284_v38 = vsub.f32 %v1133_v21, %v283_v30 }
   0xf   :  { %v75_v36 = vsub.f32 %v73_v19, %v74_v28  ;;  %159 = vmatmul.f32.vlgmr.msra.gmra.mxu3 %v74_v28  ;;  %v1160_v39 = vand.u32 4294901760, %v224_v27  ;;  %v99_v41 = vand.u32 4294901760, %v98_v32  ;;  %v105_v42 = vand.u32 4294901760, %v104_v33  ;;  %184 = vmatpush.msrb.mxu0 %v103_v24 }
  0x10   :  { %v290_v43 = vsub.f32 %v1136_v22, %v289_v31  ;;  %235 = vmatpush.msrb.mxu2 %v1108_v10  ;;  %v279_v48 = vand.u32 4294901760, %v278_v37  ;;  %v285_v49 = vand.u32 4294901760, %v284_v38  ;;  %v296_v50 = vsub.f32 %v1140_v25, %v295_v34 }
  0x11   :  { %v76_v47 = vand.u32 4294901760, %v75_v36  ;;  %100 = vmatpush.msra.mxu1 %v99_v41  ;;  %v302_v53 = vsub.f32 %v1143_v26, %v301_v35  ;;  %v1192_v54 = vsub.f32 %v224_v27, %v1160_v39  ;;  %v1194_v55 = vand.u32 4294901760, %v223_v40  ;;  %v214_v36 = vld [vmem:[%s1657_s3] sm:$0xff] }
  0x12   :  { %237 = vmatpush.msrb.mxu2 %v1110_v11  ;;  %280 = vmatpush.msrb.mxu3 %v279_v48  ;;  %v291_v56 = vand.u32 4294901760, %v290_v43  ;;  %v1196_v57 = vand.u32 4294901760, %v222_v44  ;;  %v1198_v58 = vand.u32 4294901760, %v221_v45  ;;  %v1200_v59 = vand.u32 4294901760, %v220_v46 }
  0x13   :  { %77 = vmatmul.f32.vlgmr.msra.gmra.mxu0 %v76_v47  ;;  %106 = vmatpush.msra.mxu1 %v105_v42  ;;  %v307_v60 = vand.u32 4294901760, %v1192_v54  ;;  %v1205_v61 = vsub.f32 %v223_v40, %v1194_v55  ;;  %v1207_v62 = vand.u32 4294901760, %v219_v51  ;;  %v1209_v63 = vand.u32 4294901760, %v218_v52 }
  0x14   :  { %239 = vmatpush.msrb.mxu2 %v1112_v12  ;;  %108 = vmatmul.f32.vlgmr.msra.gmra.mxu1 %v1106_v9  ;;  %v297_v1 = vand.u32 4294901760, %v296_v50  ;;  %v1216_v2 = vsub.f32 %v222_v44, %v1196_v57  ;;  %v1219_v5 = vsub.f32 %v221_v45, %v1198_v58  ;;  %v1222_v6 = vsub.f32 %v220_v46, %v1200_v59 }
  0x15   :  { %286 = vmatpush.msrb.mxu3 %v285_v49  ;;  %205 = vmatpush.msrb.mxu1 %v1093_v3  ;;  %v303_v7 = vand.u32 4294901760, %v302_v53  ;;  %v308_v8 = vsub.f32 %v1192_v54, %v307_v60  ;;  %v313_v13 = vand.u32 4294901760, %v1205_v61  ;;  %v1233_v16 = vsub.f32 %v219_v51, %v1207_v62  ;;  %v216_v3 = vld [vmem:[%s1657_s3 + $0x10] sm:$0xff] }
  0x16   :  { %241 = vmatpush.msrb.mxu2 %v1124_v17  ;;  %v319_v14 = vand.u32 4294901760, %v1216_v2  ;;  %v325_v15 = vand.u32 4294901760, %v1219_v5  ;;  %v1235_v19 = vand.u32 4294901760, %v217_v0  ;;  %378 = vmatpush.msra.mxu0 %v1130_v20  ;;  %v1247_v24 = vsub.f32 %v218_v52, %v1209_v63  ;;  %v589_v20 = vld [vmem:[%s1659_s5 + $0x68] sm:$0xff] }
  0x17   :  { %292 = vmatpush.msrb.mxu3 %v291_v56  ;;  %207 = vmatpush.msrb.mxu1 %v1095_v4  ;;  %v314_v23 = vsub.f32 %v1205_v61, %v313_v13  ;;  %v309_v27 = vand.u32 4294901760, %v308_v8  ;;  %v331_v32 = vand.u32 4294901760, %v1222_v6  ;;  %v215_v4 = vld [vmem:[%s1657_s3 + $0x8] sm:$0xff]  ;;  %v1258_v33 = vand.u32 4294901760, %v216_v3 }
  0x18   :  { %243 = vmatpush.msrb.mxu2 %v1126_v18  ;;  %v320_v28 = vsub.f32 %v1216_v2, %v319_v14  ;;  %381 = vmatpush.msra.mxu0 %v1133_v21  ;;  %v326_v38 = vsub.f32 %v1219_v5, %v325_v15  ;;  %v337_v40 = vand.u32 4294901760, %v1233_v16  ;;  %v1270_v41 = vsub.f32 %v217_v0, %v1235_v19 }
  0x19   :  { %298 = vmatpush.msrb.mxu3 %v297_v1  ;;  %431 = vmatpush.msra.mxu1 %v1108_v10  ;;  %v315_v37 = vand.u32 4294901760, %v314_v23  ;;  %v343_v42 = vand.u32 4294901760, %v1247_v24  ;;  %v1274_v43 = vand.u32 4294901760, %v215_v4  ;;  %v332_v45 = vsub.f32 %v1222_v6, %v331_v32 }
  0x1a   :  { %245 = vmatpush.msrb.mxu2 %v1160_v39  ;;  %384 = vmatpush.msra.mxu0 %v1136_v22  ;;  %v321_v44 = vand.u32 4294901760, %v320_v28  ;;  %v1282_v46 = vsub.f32 %v216_v3, %v1258_v33  ;;  %v1284_v47 = vand.u32 4294901760, %v214_v36  ;;  %v327_v48 = vand.u32 4294901760, %v326_v38 }
  0x1b   :  { %186 = vmatmul.f32.vlgmr.msrb.gmra.mxu0 %v1106_v9  ;;  %304 = vmatpush.msrb.mxu3 %v303_v7  ;;  %v349_v49 = vand.u32 4294901760, %v1270_v41  ;;  %v1293_v50 = vsub.f32 %v215_v4, %v1274_v43  ;;  %v333_v51 = vand.u32 4294901760, %v332_v45  ;;  %v344_v52 = vsub.f32 %v1247_v24, %v343_v42 }
  0x1c   :  { %247 = vmatpush.msrb.mxu2 %v1194_v55  ;;  %209 = vmatmul.f32.vlgmr.msrb.gmra.mxu1 %v1106_v9  ;;  %v338_v9 = vsub.f32 %v1233_v16, %v337_v40  ;;  %v355_v53 = vand.u32 4294901760, %v1282_v46  ;;  %v1303_v56 = vsub.f32 %v214_v36, %v1284_v47 }
  0x1d   :  { %310 = vmatpush.msrb.mxu3 %v309_v27  ;;  %433 = vmatpush.msra.mxu1 %v1110_v11  ;;  %v350_v1 = vsub.f32 %v1270_v41, %v349_v49  ;;  %v361_v7 = vand.u32 4294901760, %v1293_v50  ;;  %v345_v8 = vand.u32 4294901760, %v344_v52 }
  0x1e   :  { %249 = vmatpush.msrb.mxu2 %v1196_v57  ;;  %387 = vmatpush.msra.mxu0 %v1140_v25  ;;  %v339_v0 = vand.u32 4294901760, %v338_v9  ;;  %v356_v3 = vsub.f32 %v1282_v46, %v355_v53  ;;  %v367_v23 = vand.u32 4294901760, %v1303_v56 }
  0x1f   :  { %316 = vmatpush.msrb.mxu3 %v315_v37  ;;  %435 = vmatpush.msra.mxu1 %v1112_v12  ;;  %v351_v27 = vand.u32 4294901760, %v350_v1  ;;  %v362_v28 = vsub.f32 %v1293_v50, %v361_v7 }
  0x20   :  { %251 = vmatpush.msrb.mxu2 %v1198_v58  ;;  %390 = vmatpush.msra.mxu0 %v1143_v26  ;;  %v357_v4 = vand.u32 4294901760, %v356_v3  ;;  %v368_v36 = vsub.f32 %v1303_v56, %v367_v23 }
  0x21   :  { %322 = vmatpush.msrb.mxu3 %v321_v44  ;;  %437 = vmatpush.msra.mxu1 %v1124_v17  ;;  %v363_v37 = vand.u32 4294901760, %v362_v28 }
  0x22   :  { %253 = vmatpush.msrb.mxu2 %v1200_v59  ;;  %393 = vmatpush.msra.mxu0 %v1192_v54  ;;  %v369_v38 = vand.u32 4294901760, %v368_v36  ;;  %v579_v36 = vld [vmem:[%s1659_s5 + $0x18] sm:$0xff] }
  0x23   :  { %328 = vmatpush.msrb.mxu3 %v327_v48  ;;  %439 = vmatpush.msra.mxu1 %v1126_v18  ;;  %v582_v48 = vld [vmem:[%s1659_s5 + $0x30] sm:$0xff] }
  0x24   :  { %255 = vmatpush.msrb.mxu2 %v1207_v62  ;;  %396 = vmatpush.msra.mxu0 %v1205_v61  ;;  %v1504_v3 = vand.u32 4294901760, %v582_v48 }
  0x25   :  { %334 = vmatpush.msrb.mxu3 %v333_v51  ;;  %441 = vmatpush.msra.mxu1 %v1160_v39  ;;  %v581_v51 = vld [vmem:[%s1659_s5 + $0x28] sm:$0xff] }
  0x26   :  { %257 = vmatpush.msrb.mxu2 %v1209_v63  ;;  %399 = vmatpush.msra.mxu0 %v1216_v2 }
  0x27   :  { %340 = vmatpush.msrb.mxu3 %v339_v0  ;;  %443 = vmatpush.msra.mxu1 %v1194_v55  ;;  %v580_v0 = vld [vmem:[%s1659_s5 + $0x20] sm:$0xff] }
  0x28   :  { %259 = vmatpush.msrb.mxu2 %v1235_v19  ;;  %402 = vmatpush.msra.mxu0 %v1219_v5 }
  0x29   :  { %346 = vmatpush.msrb.mxu3 %v345_v8  ;;  %445 = vmatpush.msra.mxu1 %v1196_v57 }
  0x2a   :  { %261 = vmatpush.msrb.mxu2 %v1258_v33  ;;  %405 = vmatpush.msra.mxu0 %v1222_v6 }
  0x2b   :  { %352 = vmatpush.msrb.mxu3 %v351_v27  ;;  %447 = vmatpush.msra.mxu1 %v1198_v58 }
  0x2c   :  { %263 = vmatpush.msrb.mxu2 %v1274_v43  ;;  %408 = vmatpush.msra.mxu0 %v1233_v16 }
  0x2d   :  { %358 = vmatpush.msrb.mxu3 %v357_v4  ;;  %449 = vmatpush.msra.mxu1 %v1200_v59  ;;  %v1509_v4 = vand.u32 4294901760, %v581_v51 }
  0x2e   :  { %265 = vmatpush.msrb.mxu2 %v1284_v47  ;;  %411 = vmatpush.msra.mxu0 %v1247_v24 }
  0x2f   :  { %364 = vmatpush.msrb.mxu3 %v363_v37  ;;  %451 = vmatpush.msra.mxu1 %v1207_v62 }
  0x30   :  { %472 = vmatpush.msra.mxu2 %v277_v29  ;;  %414 = vmatpush.msra.mxu0 %v1270_v41  ;;  %v1415_v29 = vand.u32 4294901760, %v589_v20 }
  0x31   :  { %370 = vmatpush.msrb.mxu3 %v369_v38  ;;  %453 = vmatpush.msra.mxu1 %v1209_v63 }
  0x32   :  { %476 = vmatpush.msra.mxu2 %v283_v30  ;;  %417 = vmatpush.msra.mxu0 %v1282_v46  ;;  %v588_v30 = vld [vmem:[%s1659_s5 + $0x60] sm:$0xff]  ;;  %v1442_v61 = vsub.f32 %v589_v20, %v1415_v29 }
  0x33   :  { %539 = vmatpush.msra.mxu3 %v1108_v10  ;;  %455 = vmatpush.msra.mxu1 %v1235_v19  ;;  %v984_v10 = vld [vmem:[%s1656_s2] ss:$0 sm:$0xff] }
  0x34   :  { %480 = vmatpush.msra.mxu2 %v289_v31  ;;  %420 = vmatpush.msra.mxu0 %v1293_v50  ;;  %v587_v31 = vld [vmem:[%s1659_s5 + $0x58] sm:$0xff]  ;;  %v584_v46 = vld [vmem:[%s1659_s5 + $0x40] sm:$0xff] }
  0x35   :  { %541 = vmatpush.msra.mxu3 %v1110_v11  ;;  %457 = vmatpush.msra.mxu1 %v1258_v33  ;;  %v1428_v54 = vand.u32 4294901760, %v587_v31 }
  0x36   :  { %484 = vmatpush.msra.mxu2 %v295_v34  ;;  %423 = vmatpush.msra.mxu0 %v1303_v56  ;;  %v586_v34 = vld [vmem:[%s1659_s5 + $0x50] sm:$0xff] }
  0x37   :  { %543 = vmatpush.msra.mxu3 %v1112_v12  ;;  %459 = vmatpush.msra.mxu1 %v1274_v43  ;;  %v1451_v5 = vsub.f32 %v587_v31, %v1428_v54 }
  0x38   :  { %488 = vmatpush.msra.mxu2 %v301_v35 }
  0x39   :  { %545 = vmatpush.msra.mxu3 %v1124_v17  ;;  %461 = vmatpush.msra.mxu1 %v1284_v47  ;;  %v591_v17 = vld [vmem:[%s1659_s5 + $0x78] sm:$0xff]  ;;  %v663_v24 = vand.u32 4294901760, %v1451_v5 }
  0x3a   :  { %492 = vmatpush.msra.mxu2 %v307_v60  ;;  %v1411_v25 = vand.u32 4294901760, %v591_v17 }
  0x3b   :  { %547 = vmatpush.msra.mxu3 %v1126_v18  ;;  %v590_v18 = vld [vmem:[%s1659_s5 + $0x70] sm:$0xff] }
  0x3c   :  { %496 = vmatpush.msra.mxu2 %v313_v13  ;;  %v1413_v26 = vand.u32 4294901760, %v590_v18  ;;  %597 = vmatpush.msrb.mxu0 %v1411_v25 }
  0x3d   :  { %549 = vmatpush.msra.mxu3 %v1160_v39  ;;  %v1426_v39 = vand.u32 4294901760, %v588_v30 }
  0x3e   :  { %500 = vmatpush.msra.mxu2 %v319_v14  ;;  %v1439_v60 = vsub.f32 %v590_v18, %v1413_v26  ;;  %599 = vmatpush.msrb.mxu0 %v1413_v26 }
  0x3f   :  { %551 = vmatpush.msra.mxu3 %v1194_v55  ;;  %v1430_v55 = vand.u32 4294901760, %v586_v34  ;;  %v1448_v2 = vsub.f32 %v588_v30, %v1426_v39  ;;  %v1535_v30 = vand.u32 4294901760, %v579_v36 }
  0x40   :  { %504 = vmatpush.msra.mxu2 %v325_v15  ;;  %v645_v14 = vand.u32 4294901760, %v1439_v60  ;;  %v651_v15 = vand.u32 4294901760, %v1442_v61  ;;  %601 = vmatpush.msrb.mxu0 %v1415_v29 }
  0x41   :  { %553 = vmatpush.msra.mxu3 %v1196_v57  ;;  %v585_v57 = vld [vmem:[%s1659_s5 + $0x48] sm:$0xff]  ;;  %v1454_v6 = vsub.f32 %v586_v34, %v1430_v55 }
  0x42   :  { %508 = vmatpush.msra.mxu2 %v331_v32  ;;  %v646_v41 = vsub.f32 %v1439_v60, %v645_v14  ;;  %603 = vmatpush.msrb.mxu0 %v1426_v39 }
  0x43   :  { %555 = vmatpush.msra.mxu3 %v1198_v58  ;;  %v669_v45 = vand.u32 4294901760, %v1454_v6 }
  0x44   :  { %512 = vmatpush.msra.mxu2 %v337_v40  ;;  %v647_v50 = vand.u32 4294901760, %v646_v41  ;;  %605 = vmatpush.msrb.mxu0 %v1428_v54  ;;  %v1552_v41 = vsub.f32 %v579_v36, %v1535_v30 }
  0x45   :  { %557 = vmatpush.msra.mxu3 %v1200_v59  ;;  %v1436_v59 = vsub.f32 %v591_v17, %v1411_v25  ;;  %v670_v28 = vsub.f32 %v1454_v6, %v669_v45 }
  0x46   :  { %516 = vmatpush.msra.mxu2 %v343_v42  ;;  %v652_v42 = vsub.f32 %v1442_v61, %v651_v15  ;;  %607 = vmatpush.msrb.mxu0 %v1430_v55 }
  0x47   :  { %559 = vmatpush.msra.mxu3 %v1207_v62  ;;  %v1445_v62 = vand.u32 4294901760, %v585_v57  ;;  %v639_v13 = vand.u32 4294901760, %v1436_v59  ;;  %v671_v34 = vand.u32 4294901760, %v670_v28  ;;  %v577_v28 = vld [vmem:[%s1659_s5 + $0x8] sm:$0xff] }
  0x48   :  { %520 = vmatpush.msra.mxu2 %v349_v49  ;;  %v653_v1 = vand.u32 4294901760, %v652_v42 }
  0x49   :  { %561 = vmatpush.msra.mxu3 %v1209_v63  ;;  %v1463_v32 = vsub.f32 %v585_v57, %v1445_v62  ;;  %v640_v40 = vsub.f32 %v1436_v59, %v639_v13  ;;  %609 = vmatpush.msrb.mxu0 %v1445_v62 }
  0x4a   :  { %524 = vmatpush.msra.mxu2 %v355_v53  ;;  %v664_v53 = vsub.f32 %v1451_v5, %v663_v24 }
  0x4b   :  { %563 = vmatpush.msra.mxu3 %v1235_v19  ;;  %v657_v19 = vand.u32 4294901760, %v1448_v2  ;;  %v641_v49 = vand.u32 4294901760, %v640_v40  ;;  %v675_v56 = vand.u32 4294901760, %v1463_v32 }
  0x4c   :  { %528 = vmatpush.msra.mxu2 %v361_v7  ;;  %v1499_v7 = vand.u32 4294901760, %v584_v46  ;;  %v665_v17 = vand.u32 4294901760, %v664_v53 }
  0x4d   :  { %565 = vmatpush.msra.mxu3 %v1258_v33  ;;  %v658_v44 = vsub.f32 %v1448_v2, %v657_v19  ;;  %642 = vmatpush.msrb.mxu1 %v641_v49  ;;  %v676_v18 = vsub.f32 %v1463_v32, %v675_v56  ;;  %v711_v49 = vand.u32 4294901760, %v1552_v41 }
  0x4e   :  { %532 = vmatpush.msra.mxu2 %v367_v23  ;;  %v1515_v37 = vsub.f32 %v584_v46, %v1499_v7  ;;  %611 = vmatpush.msrb.mxu0 %v1499_v7 }
  0x4f   :  { %567 = vmatpush.msra.mxu3 %v1274_v43  ;;  %v659_v27 = vand.u32 4294901760, %v658_v44  ;;  %648 = vmatpush.msrb.mxu1 %v647_v50  ;;  %v712_v53 = vsub.f32 %v1552_v41, %v711_v49 }
  0x50   :  { %v681_v20 = vand.u32 4294901760, %v1515_v37 }
  0x51   :  { %569 = vmatpush.msra.mxu3 %v1284_v47  ;;  %v583_v47 = vld [vmem:[%s1659_s5 + $0x38] sm:$0xff]  ;;  %654 = vmatpush.msrb.mxu1 %v653_v1  ;;  %v713_v1 = vand.u32 4294901760, %v712_v53 }
  0x52   :  { %v1502_v8 = vand.u32 4294901760, %v583_v47 }
  0x53   :  { %660 = vmatpush.msrb.mxu1 %v659_v27 }
  0x54   :  { %v1518_v38 = vsub.f32 %v583_v47, %v1502_v8  ;;  %613 = vmatpush.msrb.mxu0 %v1502_v8 }
  0x55   :  { %666 = vmatpush.msrb.mxu1 %v665_v17  ;;  %v576_v17 = vld [vmem:[%s1659_s5] sm:$0xff] }
  0x56   :  { %615 = vmatpush.msrb.mxu0 %v1504_v3 }
  0x57   :  { %672 = vmatpush.msrb.mxu1 %v671_v34  ;;  %v626_v34 = vand.u32 4294901760, %v576_v17 }
  0x58   :  { %617 = vmatpush.msrb.mxu0 %v1509_v4 }
  0x90   :  { %v78_v11 = vpop.f32.mrf.mxu0 }
  0x91   :  { %v79_v12 = vadd.f32 %v984_v10, %v78_v11  ;;  %v109_v21 = vpop.f32.mrf.mxu1  ;;  %v135_v22 = vpop.f32.mrf.mxu2  ;;  %v1522_v10 = vsub.f32 %v582_v48, %v1504_v3  ;;  %v1524_v11 = vand.u32 4294901760, %v580_v0 }
  0x92   :  { %v160_v58 = vpop.f32.mrf.mxu3 }
  0x93   :  { %v110_v35 = vadd.f32 %v109_v21, %v79_v12  ;;  %v687_v21 = vand.u32 4294901760, %v1518_v38  ;;  %v693_v57 = vand.u32 4294901760, %v1522_v10  ;;  %619 = vmatpush.msrb.mxu0 %v1524_v11 }
  0x95   :  { %v136_v63 = vadd.f32 %v135_v22, %v110_v35  ;;  %v1533_v22 = vsub.f32 %v581_v51, %v1509_v4  ;;  %v682_v35 = vsub.f32 %v1515_v37, %v681_v20  ;;  %v694_v44 = vsub.f32 %v1522_v10, %v693_v57  ;;  %621 = vmatpush.msrb.mxu0 %v1535_v30 }
  0x97   :  { %v161_v16 = vadd.f32 %v160_v58, %v136_v63  ;;  %v1543_v58 = vsub.f32 %v580_v0, %v1524_v11  ;;  %v699_v40 = vand.u32 4294901760, %v1533_v22  ;;  %v695_v50 = vand.u32 4294901760, %v694_v44 }
  0x98   :  { %v187_v33 = vpop.f32.mrf.mxu0 }
  0x99   :  { %v188_v43 = vadd.f32 %v187_v33, %v161_v16  ;;  %v210_v9 = vpop.f32.mrf.mxu1  ;;  %v677_v16 = vand.u32 4294901760, %v676_v18  ;;  %v688_v33 = vsub.f32 %v1518_v38, %v687_v21  ;;  %v705_v46 = vand.u32 4294901760, %v1543_v58 }
  0x9b   :  { %v211_v52 = vadd.f32 %v210_v9, %v188_v43  ;;  %v683_v43 = vand.u32 4294901760, %v682_v35  ;;  %678 = vmatpush.msrb.mxu1 %v677_v16  ;;  %v689_v48 = vand.u32 4294901760, %v688_v33  ;;  %v700_v9 = vsub.f32 %v1533_v22, %v699_v40 }
  0x9c   :  { %v706_v51 = vsub.f32 %v1543_v58, %v705_v46  ;;  %v728_v16 = vsub.f32 %v576_v17, %v626_v34 }
  0x9d   :  { %v213_v23 = vmax.f32 %v211_v52, 0.0  ;;  %684 = vmatpush.msrb.mxu1 %v683_v43  ;;  %v701_v52 = vand.u32 4294901760, %v700_v9 }
  0x9e   :  { %v707_v0 = vand.u32 4294901760, %v706_v51  ;;  %v729_v43 = vand.u32 4294901760, %v728_v16 }
  0x9f   :  { %v266_v12 = vand.u32 4294901760, %v213_v23  ;;  %690 = vmatpush.msrb.mxu1 %v689_v48 }
  0xa1   :  { %v267_v31 = vsub.f32 %v213_v23, %v266_v12  ;;  %372 = vmatmul.f32.vlgmr.msrb.gmra.mxu3 %v266_v12  ;;  %696 = vmatpush.msrb.mxu1 %v695_v50  ;;  %v578_v23 = vld [vmem:[%s1659_s5 + $0x10] sm:$0xff] }
  0xa2   :  { %793 = vmatpush.msrb.mxu3 %v1411_v25  ;;  %v622_v27 = vand.u32 4294901760, %v578_v23 }
  0xa3   :  { %426 = vmatmul.f32.vlgmr.msra.gmra.mxu0 %v267_v31  ;;  %v268_v63 = vand.u32 4294901760, %v267_v31  ;;  %702 = vmatpush.msrb.mxu1 %v701_v52 }
  0xa4   :  { %795 = vmatpush.msrb.mxu3 %v1413_v26  ;;  %v716_v36 = vsub.f32 %v578_v23, %v622_v27  ;;  %623 = vmatpush.msrb.mxu0 %v622_v27 }
  0xa5   :  { %465 = vmatmul.f32.vlgmr.msra.gmra.mxu1 %v268_v63  ;;  %v269_v42 = vsub.f32 %v267_v31, %v268_v63 }
  0xa6   :  { %797 = vmatpush.msrb.mxu3 %v1415_v29  ;;  %708 = vmatpush.msrb.mxu1 %v707_v0  ;;  %v717_v18 = vand.u32 4294901760, %v716_v36 }
  0xa7   :  { %v270_v47 = vand.u32 4294901760, %v269_v42 }
  0xa8   :  { %799 = vmatpush.msrb.mxu3 %v1426_v39  ;;  %714 = vmatpush.msrb.mxu1 %v713_v1  ;;  %v718_v35 = vsub.f32 %v716_v36, %v717_v18 }
  0xa9   :  { %271 = vmatmul.f32.vlgmr.msrb.gmra.mxu2 %v270_v47  ;;  %571 = vmatmul.f32.vlgmr.msra.gmra.mxu3 %v266_v12  ;;  %v730_v47 = vsub.f32 %v728_v16, %v729_v43 }
  0xaa   :  { %740 = vmatpush.msrb.mxu2 %v1436_v59  ;;  %801 = vmatpush.msrb.mxu3 %v1428_v54  ;;  %v719_v33 = vand.u32 4294901760, %v718_v35 }
  0xab   :  { %v731_v48 = vand.u32 4294901760, %v730_v47 }
  0xac   :  { %743 = vmatpush.msrb.mxu2 %v1439_v60  ;;  %803 = vmatpush.msrb.mxu3 %v1430_v55 }
  0xad   :  { %720 = vmatpush.msrb.mxu1 %v719_v33 }
  0xae   :  { %746 = vmatpush.msrb.mxu2 %v1442_v61  ;;  %805 = vmatpush.msrb.mxu3 %v1445_v62 }
  0xb0   :  { %749 = vmatpush.msrb.mxu2 %v1448_v2  ;;  %807 = vmatpush.msrb.mxu3 %v1499_v7 }
  0xb1   :  { %534 = vmatmul.f32.vlgmr.msra.gmra.mxu2 %v266_v12  ;;  %v624_v12 = vand.u32 4294901760, %v577_v28 }
  0xb2   :  { %752 = vmatpush.msrb.mxu2 %v1451_v5  ;;  %809 = vmatpush.msrb.mxu3 %v1502_v8 }
  0xb3   :  { %v722_v31 = vsub.f32 %v577_v28, %v624_v12  ;;  %625 = vmatpush.msrb.mxu0 %v624_v12 }
  0xb4   :  { %755 = vmatpush.msrb.mxu2 %v1454_v6  ;;  %811 = vmatpush.msrb.mxu3 %v1504_v3 }
  0xb5   :  { %v723_v63 = vand.u32 4294901760, %v722_v31  ;;  %627 = vmatpush.msrb.mxu0 %v626_v34 }
  0xb6   :  { %758 = vmatpush.msrb.mxu2 %v1463_v32  ;;  %813 = vmatpush.msrb.mxu3 %v1509_v4 }
  0xb7   :  { %834 = vmatpush.msra.mxu0 %v639_v13  ;;  %v724_v42 = vsub.f32 %v722_v31, %v723_v63 }
  0xb8   :  { %761 = vmatpush.msrb.mxu2 %v1515_v37  ;;  %815 = vmatpush.msrb.mxu3 %v1524_v11 }
  0xb9   :  { %838 = vmatpush.msra.mxu0 %v645_v14  ;;  %v725_v44 = vand.u32 4294901760, %v724_v42 }
  0xba   :  { %764 = vmatpush.msrb.mxu2 %v1518_v38  ;;  %817 = vmatpush.msrb.mxu3 %v1535_v30 }
  0xbb   :  { %842 = vmatpush.msra.mxu0 %v651_v15  ;;  %726 = vmatpush.msrb.mxu1 %v725_v44 }
  0xbc   :  { %767 = vmatpush.msrb.mxu2 %v1522_v10  ;;  %819 = vmatpush.msrb.mxu3 %v622_v27 }
  0xbd   :  { %846 = vmatpush.msra.mxu0 %v657_v19  ;;  %732 = vmatpush.msrb.mxu1 %v731_v48 }
  0xbe   :  { %770 = vmatpush.msrb.mxu2 %v1533_v22  ;;  %821 = vmatpush.msrb.mxu3 %v624_v12 }
  0xbf   :  { %901 = vmatpush.msra.mxu1 %v1411_v25  ;;  %850 = vmatpush.msra.mxu0 %v663_v24  ;;  %v985_v25 = vld [vmem:[%s1658_s4] ss:$0 sm:$0xff] }
  0xc0   :  { %773 = vmatpush.msrb.mxu2 %v1543_v58  ;;  %823 = vmatpush.msrb.mxu3 %v626_v34 }
  0xc1   :  { %903 = vmatpush.msra.mxu1 %v1413_v26  ;;  %854 = vmatpush.msra.mxu0 %v669_v45  ;;  %v986_v45 = vld [vmem:[%s1660_s6] ss:$0 sm:$0xff]  ;;  %s1046_s6 = smov [#allocation5]  }
  0xc2   :  { %776 = vmatpush.msrb.mxu2 %v1552_v41  ;;  %v937_v41 = vlaneseq  ;;  %s967_s22 = sshll.u32 %s1046_s6, 4  ;;  %s968_s22 = int_to_ptr.vmem [resolvable:$true] %s967_s22 }
  0xc3   :  { %905 = vmatpush.msra.mxu1 %v1415_v29  ;;  %858 = vmatpush.msra.mxu0 %v675_v56 }
  0xc4   :  { %779 = vmatpush.msrb.mxu2 %v716_v36 }
  0xc5   :  { %907 = vmatpush.msra.mxu1 %v1426_v39  ;;  %862 = vmatpush.msra.mxu0 %v681_v20 }
  0xc6   :  { %782 = vmatpush.msrb.mxu2 %v722_v31 }
  0xc7   :  { %909 = vmatpush.msra.mxu1 %v1428_v54  ;;  %866 = vmatpush.msra.mxu0 %v687_v21 }
  0xc8   :  { %785 = vmatpush.msrb.mxu2 %v728_v16 }
  0xc9   :  { %911 = vmatpush.msra.mxu1 %v1430_v55  ;;  %870 = vmatpush.msra.mxu0 %v693_v57 }
  0xcb   :  { %913 = vmatpush.msra.mxu1 %v1445_v62  ;;  %874 = vmatpush.msra.mxu0 %v699_v40 }
  0xcd   :  { %915 = vmatpush.msra.mxu1 %v1499_v7  ;;  %878 = vmatpush.msra.mxu0 %v705_v46 }
  0xcf   :  { %917 = vmatpush.msra.mxu1 %v1502_v8  ;;  %882 = vmatpush.msra.mxu0 %v711_v49  ;;  %v938_v49 = vand.u32 127, %v937_v41 }
  0xd1   :  { %919 = vmatpush.msra.mxu1 %v1504_v3  ;;  %886 = vmatpush.msra.mxu0 %v717_v18  ;;  %vm939_vm3 = vcmp.lt.s32.totalorder %v938_v49, 2 }
  0xd3   :  { %921 = vmatpush.msra.mxu1 %v1509_v4  ;;  %890 = vmatpush.msra.mxu0 %v723_v63 }
  0xd5   :  { %923 = vmatpush.msra.mxu1 %v1524_v11  ;;  %894 = vmatpush.msra.mxu0 %v729_v43 }
  0xd7   :  { %925 = vmatpush.msra.mxu1 %v1535_v30 }
  0xd9   :  { %927 = vmatpush.msra.mxu1 %v622_v27 }
  0xdb   :  { %929 = vmatpush.msra.mxu1 %v624_v12 }
  0xdd   :  { %931 = vmatpush.msra.mxu1 %v626_v34 }
 0x120   :  { %v427_v55 = vpop.f32.mrf.mxu0 }
 0x122   :  { %v466_v60 = vpop.f32.mrf.mxu1 }
 0x124   :  { %v373_v26 = vpop.f32.mrf.mxu3 }
 0x12c   :  { %v272_v29 = vpop.f32.mrf.mxu2  ;;  %v572_v5 = vpop.f32.mrf.mxu3 }
 0x12d   :  { %v273_v39 = vadd.f32 %v985_v25, %v272_v29 }
 0x12f   :  { %v374_v54 = vadd.f32 %v373_v26, %v273_v39 }
 0x131   :  { %v428_v59 = vadd.f32 %v427_v55, %v374_v54 }
 0x133   :  { %v467_v61 = vadd.f32 %v466_v60, %v428_v59 }
 0x134   :  { %v535_v62 = vpop.f32.mrf.mxu2 }
 0x135   :  { %v536_v2 = vadd.f32 %v535_v62, %v467_v61 }
 0x137   :  { %v573_v6 = vadd.f32 %v572_v5, %v536_v2 }
 0x139   :  { %v575_v13 = vmax.f32 %v573_v6, 0.0 }
 0x13b   :  { %v628_v14 = vand.u32 4294901760, %v575_v13 }
 0x13d   :  { %v629_v15 = vsub.f32 %v575_v13, %v628_v14  ;;  %734 = vmatmul.f32.vlgmr.msrb.gmra.mxu1 %v628_v14 }
 0x13f   :  { %788 = vmatmul.f32.vlgmr.msrb.gmra.mxu2 %v629_v15  ;;  %v630_v19 = vand.u32 4294901760, %v629_v15 }
 0x141   :  { %827 = vmatmul.f32.vlgmr.msrb.gmra.mxu3 %v630_v19  ;;  %v631_v24 = vsub.f32 %v629_v15, %v630_v19 }
 0x143   :  { %v632_v32 = vand.u32 4294901760, %v631_v24 }
 0x145   :  { %633 = vmatmul.f32.vlgmr.msrb.gmra.mxu0 %v632_v32  ;;  %933 = vmatmul.f32.vlgmr.msra.gmra.mxu1 %v628_v14 }
 0x14d   :  { %896 = vmatmul.f32.vlgmr.msra.gmra.mxu0 %v628_v14 }
 0x1ba   :  { %v735_v56 = vpop.f32.mrf.mxu1 }
 0x1c2   :  { %v634_v7 = vpop.f32.mrf.mxu0  ;;  %v789_v4 = vpop.f32.mrf.mxu2 }
 0x1c3   :  { %v635_v8 = vadd.f32 %v986_v45, %v634_v7  ;;  %v934_v21 = vpop.f32.mrf.mxu1 }
 0x1c4   :  { %v828_v38 = vpop.f32.mrf.mxu3 }
 0x1c5   :  { %v736_v3 = vadd.f32 %v735_v56, %v635_v8 }
 0x1c7   :  { %v790_v37 = vadd.f32 %v789_v4, %v736_v3 }
 0x1c9   :  { %v829_v10 = vadd.f32 %v828_v38, %v790_v37 }
 0x1ca   :  { %v897_v11 = vpop.f32.mrf.mxu0 }
 0x1cb   :  { %v898_v20 = vadd.f32 %v897_v11, %v829_v10 }
 0x1cd   :  { %v935_v22 = vadd.f32 %v934_v21, %v898_v20 }
 0x1cf   :  { %v979_v30 = vmul.f32 -1.442695, %v935_v22 }
 0x1d1   :  { %987 = vpow2.f32 %v979_v30 }
 0x1d7   :  { %v988_v57 = vpop.eup %987 }
 0x1d8   :  { %v943_v58 = vadd.f32 1.0, %v988_v57 }
 0x1da   :  { %989 = vrcp.f32 %v943_v58  ;;  %v955_v50 = vand.u32 2147483648, %v943_v58  ;;  %v953_v52 = vand.u32 2147483647, %v943_v58  ;;  %vm949_vm2 = vweird.f32 %v943_v58 }
 0x1dc   :  { %v956_v0 = vor.u32 1.1754944e-38, %v955_v50  ;;  %vm954_vm5 = vcmp.eq.f32.partialorder %v953_v52, 8.507059e+37 }
 0x1e0   :  { %v990_v40 = vpop.eup %989 }
 0x1e1   :  { %v945_v46 = vmul.f32 %v990_v40, %v943_v58  ;;  %vm950_vm1 = vweird.f32 %v990_v40 }
 0x1e2   :  { %vm951_vm4 = vmor %vm949_vm2, %vm950_vm1 }
 0x1e3   :  { %v946_v9 = vsub.f32 1.0, %v945_v46 }
 0x1e5   :  { %v947_v51 = vmul.f32 %v990_v40, %v946_v9 }
 0x1e7   :  { %v948_v53 = vadd.f32 %v990_v40, %v947_v51 }
 0x1e9   :  { %v952_v1 = vsel %vm951_vm4, %v990_v40, %v948_v53 }
 0x1ea   :  { %v957_v23 = vsel %vm954_vm5, %v956_v0, %v952_v1 }
 0x1eb   :  { %v959_v27 = vsel %vm939_vm3, %v957_v23, %v935_v22 }
 0x1ec   :  { %961 = vst.msk [vmem:[#allocation5] sm:$0xff] %vm960_vm6, %v959_v27 }
 0x1ed   :  { %972 = dma.vmem_to_hbm [thread:$0]  %s968_s22, 128, %s970_s25, [#allocation4]  }
 0x1ee   :  { %1041 = dma.done.wait [#allocation4], 128  }
 0x1ef   :  { %1042 = vsyncadd [#allocation4], 4294967168 }
 0x1f0   :  { %977 = vsyncpa [#allocation3], 1 }
 0x1f1   :  { %978 = vsyncpa [#allocation4], 1 }

</bundles_post_ra>
